<compile_context>
chip_gen: v5e
topology: v5e:2x2
jax: 0.10.0
libtpu: 0.0.40
codegen_flags: <defaults>
</compile_context>

<pallas_src>
import functools
import math

import jax
import jax.numpy as jnp
from jax.experimental import pallas as pl
from jax.experimental.pallas import tpu as pltpu

LANE = 128
MAX_TILE_ROWS = 2048   # 2048 x 128 f32 = 1 MiB per block
ROW_ALIGN = 32         # multiple of 32 rows satisfies f32/bf16/int8 sublane tiling


def _round_up(a, b):
    return (a + b - 1) // b * b


def _pick_tile_rows(aligned_rows):
    """Largest tile that divides the aligned row count (no extra padding) if
    possible; otherwise fall back to MAX_TILE_ROWS and pad."""
    if aligned_rows <= MAX_TILE_ROWS:
        return aligned_rows                      # single tile
    for cand in (MAX_TILE_ROWS, 1024, 512, 256):
        if aligned_rows % cand == 0:
            return cand                          # evenly divides: zero padding
    return MAX_TILE_ROWS                         # rare fallback: pad to a multiple


# ---------------------------------------------------------------------------
# Fused kernel: pass 0 = streaming min/max, pass boundary = range/scale update,
# pass 1 = elementwise symmetric quantization.
# ---------------------------------------------------------------------------
def _fused_quant_kernel(buf_ref,                       # scalar prefetch: [x_min, x_max]
                        x_ref,                         # (tile_rows, 128) input tile
                        q_ref,                         # (tile_rows, 128) output tile
                        nmin_ref, nmax_ref, scale_ref, # (1,1) SMEM scalar outputs
                        vmin_acc, vmax_acc,            # (1,128) VMEM accumulators
                        inv_sm,                        # (1,) SMEM scratch: 1/scale
                        *, n, momentum, total, tile_rows, mask_pad):
    p = pl.program_id(0)   # 0 = reduction pass, 1 = quantization pass
    i = pl.program_id(1)   # row-tile index

    # ---- pass 0: elementwise (VPU) min/max accumulation, no cross-lane work ----
    @pl.when(jnp.logical_and(p == 0, i == 0))
    def _init():
        vmin_acc[...] = jnp.full((1, LANE), jnp.inf, dtype=jnp.float32)
        vmax_acc[...] = jnp.full((1, LANE), -jnp.inf, dtype=jnp.float32)

    @pl.when(p == 0)
    def _reduce():
        xv = x_ref[...].astype(jnp.float32)
        if mask_pad:
            r = jax.lax.broadcasted_iota(jnp.int32, xv.shape, 0)
            c = jax.lax.broadcasted_iota(jnp.int32, xv.shape, 1)
            flat = (i * tile_rows + r) * LANE + c
            valid = flat < total
            x_for_min = jnp.where(valid, xv, jnp.inf)
            x_for_max = jnp.where(valid, xv, -jnp.inf)
        else:
            x_for_min = xv
            x_for_max = xv
        vmin_acc[...] = jnp.minimum(vmin_acc[...],
                                    jnp.min(x_for_min, axis=0, keepdims=True))
        vmax_acc[...] = jnp.maximum(vmax_acc[...],
                                    jnp.max(x_for_max, axis=0, keepdims=True))

    # ---- pass boundary: one cross-lane reduce, running-stat update, scale ----
    @pl.when(jnp.logical_and(p == 1, i == 0))
    def _finalize():
        batch_min = jnp.min(vmin_acc[...])
        batch_max = jnp.max(vmax_acc[...])
        old_min = buf_ref[0]
        old_max = buf_ref[1]
        same = old_min == old_max            # first batch: buffers still equal -> add
        if momentum == -1:
            new_min = jnp.where(same, old_min + batch_min,
                                jnp.minimum(old_min, batch_min))
            new_max = jnp.where(same, old_max + batch_max,
                                jnp.maximum(old_max, batch_max))
        else:
            new_min = jnp.where(same, old_min + batch_min,
                                old_min * momentum + batch_min * (1.0 - momentum))
            new_max = jnp.where(same, old_max + batch_max,
                                old_max * momentum + batch_max * (1.0 - momentum))
        sat = jnp.maximum(jnp.abs(new_min), jnp.abs(new_max))
        scale = jnp.maximum(sat, 1e-8) / n
        nmin_ref[0, 0] = new_min
        nmax_ref[0, 0] = new_max
        scale_ref[0, 0] = scale
        inv_sm[0] = 1.0 / scale              # hoisted reciprocal, reused by all tiles

    # ---- pass 1: elementwise symmetric quantization ----
    @pl.when(p == 1)
    def _quantize():
        q = jnp.round(x_ref[...].astype(jnp.float32) * inv_sm[0])
        q = jnp.clip(q, -float(n), float(n - 1))
        q_ref[...] = q.astype(q_ref.dtype)


# ---------------------------------------------------------------------------
# Quantize-only kernel (running_stat=False / fixed range): scale from buffers.
# ---------------------------------------------------------------------------
def _quant_only_kernel(inv_ref, x_ref, q_ref, *, n):
    q = jnp.round(x_ref[...].astype(jnp.float32) * inv_ref[0])
    q_ref[...] = jnp.clip(q, -float(n), float(n - 1)).astype(q_ref.dtype)


# ---------------------------------------------------------------------------
# QuantAct forward
# ---------------------------------------------------------------------------
def quant_act_forward(x, x_min_buf, x_max_buf, *, activation_bit=4,
                      act_range_momentum=0.95, running_stat=True,
                      full_precision_flag=False):
    """Returns ((quant_act_int_list, scale_list), (new_x_min, new_x_max))."""
    if isinstance(x, (list, tuple)):
        x = x[0]
    if full_precision_flag:
        return (x, None), (x_min_buf, x_max_buf)

    orig_shape = x.shape
    out_dtype = x.dtype
    n = 2 ** (activation_bit - 1) - 1

    # lane-dense 2-D view of the flattened activation
    total = int(math.prod(orig_shape))
    rows_raw = (total + LANE - 1) // LANE
    aligned_rows = _round_up(rows_raw, ROW_ALIGN)
    tile_rows = _pick_tile_rows(aligned_rows)
    rows = _round_up(aligned_rows, tile_rows)
    padded_total = rows * LANE
    num_tiles = rows // tile_rows
    mask_pad = padded_total != total

    x_flat = jnp.reshape(x, (total,))
    if mask_pad:
        # zero-pad to a whole number of tiles; padding is masked out of the
        # min/max inside the kernel and sliced off the quantized output below.
        x_flat = jnp.pad(x_flat, (0, padded_total - total))
    x2d = jnp.reshape(x_flat, (rows, LANE))

    if running_stat:
        buf = jnp.stack([jnp.reshape(x_min_buf, ()).astype(jnp.float32),
                         jnp.reshape(x_max_buf, ()).astype(jnp.float32)])
        kernel = functools.partial(
            _fused_quant_kernel, n=n, momentum=float(act_range_momentum),
            total=total, tile_rows=tile_rows, mask_pad=mask_pad)
        q2d, new_min, new_max, scale = pl.pallas_call(
            kernel,
            out_shape=(
                jax.ShapeDtypeStruct((rows, LANE), out_dtype),
                jax.ShapeDtypeStruct((1, 1), jnp.float32),
                jax.ShapeDtypeStruct((1, 1), jnp.float32),
                jax.ShapeDtypeStruct((1, 1), jnp.float32),
            ),
            grid_spec=pltpu.PrefetchScalarGridSpec(
                num_scalar_prefetch=1,
                grid=(2, num_tiles),
                in_specs=[pl.BlockSpec((tile_rows, LANE), lambda p, i, b: (i, 0))],
                out_specs=(
                    # stays resident on block 0 during the reduction pass, then
                    # walks the tiles during the quantization pass
                    pl.BlockSpec((tile_rows, LANE), lambda p, i, b: (i * p, 0)),
                    pl.BlockSpec((1, 1), lambda p, i, b: (0, 0),
                                 memory_space=pltpu.SMEM),
                    pl.BlockSpec((1, 1), lambda p, i, b: (0, 0),
                                 memory_space=pltpu.SMEM),
                    pl.BlockSpec((1, 1), lambda p, i, b: (0, 0),
                                 memory_space=pltpu.SMEM),
                ),
                scratch_shapes=[
                    pltpu.VMEM((1, LANE), jnp.float32),   # running min (per lane)
                    pltpu.VMEM((1, LANE), jnp.float32),   # running max (per lane)
                    pltpu.SMEM((1,), jnp.float32),        # 1 / scale
                ],
            ),
            compiler_params=pltpu.CompilerParams(
                dimension_semantics=("arbitrary", "arbitrary")),
        )(buf, x2d)
        new_min = jnp.reshape(new_min, ())
        new_max = jnp.reshape(new_max, ())
        scale = jnp.reshape(scale, ())
    else:
        # range is fixed (module.fix()): scale comes straight from the buffers.
        new_min, new_max = x_min_buf, x_max_buf
        omin = jnp.reshape(x_min_buf, ()).astype(jnp.float32)
        omax = jnp.reshape(x_max_buf, ()).astype(jnp.float32)
        sat = jnp.maximum(jnp.abs(omin), jnp.abs(omax))
        scale = jnp.maximum(sat, 1e-8) / n
        inv_scale = jnp.reshape(1.0 / scale, (1,)).astype(jnp.float32)
        q2d = pl.pallas_call(
            functools.partial(_quant_only_kernel, n=n),
            out_shape=jax.ShapeDtypeStruct((rows, LANE), out_dtype),
            grid_spec=pltpu.PrefetchScalarGridSpec(
                num_scalar_prefetch=1,
                grid=(num_tiles,),
                in_specs=[pl.BlockSpec((tile_rows, LANE), lambda i, s: (i, 0))],
                out_specs=pl.BlockSpec((tile_rows, LANE), lambda i, s: (i, 0)),
            ),
            compiler_params=pltpu.CompilerParams(
                dimension_semantics=("parallel",)),
        )(inv_scale, x2d)

    q_flat = jnp.reshape(q2d, (padded_total,))
    if mask_pad:
        q_flat = q_flat[:total]
    quant_act_int = jnp.reshape(q_flat, orig_shape)

    # module returns ([quant_act_int], [act_scaling_factor.view(-1, 1, 1)])
    return ([quant_act_int], [jnp.reshape(scale, (1, 1, 1))]), (new_min, new_max)


# ---------------------------------------------------------------------------
# Pure-JAX reference (mirrors the module math) for silent correctness checks.
# ---------------------------------------------------------------------------
def _ref_range_scale(x, old_min, old_max, activation_bit=4, momentum=0.95,
                     running_stat=True):
    n = 2 ** (activation_bit - 1) - 1
    old_min = jnp.reshape(old_min, ()).astype(jnp.float32)
    old_max = jnp.reshape(old_max, ()).astype(jnp.float32)
    if running_stat:
        xf = x.astype(jnp.float32)
        bmin, bmax = jnp.min(xf), jnp.max(xf)
        same = old_min == old_max
        if momentum == -1:
            new_min = jnp.where(same, old_min + bmin, jnp.minimum(old_min, bmin))
            new_max = jnp.where(same, old_max + bmax, jnp.maximum(old_max, bmax))
        else:
            new_min = jnp.where(same, old_min + bmin,
                                old_min * momentum + bmin * (1.0 - momentum))
            new_max = jnp.where(same, old_max + bmax,
                                old_max * momentum + bmax * (1.0 - momentum))
    else:
        new_min, new_max = old_min, old_max
    sat = jnp.maximum(jnp.abs(new_min), jnp.abs(new_max))
    scale = jnp.maximum(sat, 1e-8) / n
    return scale, new_min, new_max


def _ref_quant(x, scale, activation_bit=4):
    n = 2 ** (activation_bit - 1) - 1
    q = jnp.round(x.astype(jnp.float32) * (1.0 / scale))
    return jnp.clip(q, -n, n - 1).astype(x.dtype)


if __name__ == "__main__":
    key = jax.random.PRNGKey(0)
    k1, k2, k3 = jax.random.split(key, 3)

    x_min = jnp.zeros((), jnp.float32)   # registered buffers start at 0
    x_max = jnp.zeros((), jnp.float32)

    # ---- forward 1: conv-style NCHW activation, first batch ("add" branch) ----
    x1 = jax.random.normal(k1, (2, 4, 16, 16), dtype=jnp.float32)
    (q_l, s_l), (x_min, x_max) = quant_act_forward(x1, x_min, x_max, activation_bit=4)
    q1, s1 = jax.block_until_ready((q_l[0], s_l[0]))
    rs1, rmin1, rmax1 = _ref_range_scale(x1, 0.0, 0.0)
    assert q1.shape == x1.shape and q1.dtype == x1.dtype and s1.shape == (1, 1, 1)
    assert jnp.allclose(s1.reshape(()), rs1, rtol=1e-5, atol=1e-8)
    assert jnp.allclose(x_min, rmin1, rtol=1e-5, atol=1e-6)
    assert jnp.allclose(x_max, rmax1, rtol=1e-5, atol=1e-6)
    assert jnp.allclose(q1, _ref_quant(x1, s1.reshape(())), atol=1e-5)

    # ---- forward 2: ragged [S,B,H] tensor (padding + mask path), EMA branch ----
    x2 = jax.random.normal(k2, (3, 5, 77), dtype=jnp.float32)
    old_min, old_max = x_min, x_max
    (q_l, s_l), (x_min, x_max) = quant_act_forward(x2, old_min, old_max, activation_bit=4)
    q2, s2 = jax.block_until_ready((q_l[0], s_l[0]))
    rs2, rmin2, rmax2 = _ref_range_scale(x2, old_min, old_max)
    assert jnp.allclose(s2.reshape(()), rs2, rtol=1e-5, atol=1e-8)
    assert jnp.allclose(x_min, rmin2, rtol=1e-5, atol=1e-6)
    assert jnp.allclose(x_max, rmax2, rtol=1e-5, atol=1e-6)
    assert jnp.allclose(q2, _ref_quant(x2, s2.reshape(())), atol=1e-5)

    # ---- forward 3: larger bf16 activation (multi-tile, no padding), EMA branch ----
    x3 = jax.random.normal(k3, (8, 64, 1024), dtype=jnp.float32).astype(jnp.bfloat16)
    old_min, old_max = x_min, x_max
    (q_l, s_l), (x_min, x_max) = quant_act_forward(x3, old_min, old_max, activation_bit=4)
    q3, s3 = jax.block_until_ready((q_l[0], s_l[0]))
    rs3, _, _ = _ref_range_scale(x3, old_min, old_max)
    assert q3.dtype == jnp.bfloat16
    assert jnp.allclose(s3.reshape(()), rs3, rtol=1e-5, atol=1e-8)
    assert jnp.allclose(q3.astype(jnp.float32),
                        _ref_quant(x3, s3.reshape(())).astype(jnp.float32), atol=1e-5)

    # ---- forward 4: fixed range (running_stat=False -> quantize-only kernel) ----
    (q_l, s_l), (fmin, fmax) = quant_act_forward(x1, x_min, x_max, activation_bit=4,
                                                 running_stat=False)
    q4, s4 = jax.block_until_ready((q_l[0], s_l[0]))
    rs4, _, _ = _ref_range_scale(x1, x_min, x_max, running_stat=False)
    assert jnp.allclose(s4.reshape(()), rs4, rtol=1e-6)
    assert jnp.allclose(q4, _ref_quant(x1, s4.reshape(())), atol=1e-5)
    assert jnp.allclose(fmin, x_min) and jnp.allclose(fmax, x_max)

    print("KERNEL_OK")
</pallas_src>

<mosaic_0001>
module attributes {stable_mosaic.version = 11 : i64} {
  func.func @_fused_quant_kernel(%arg0: i32, %arg1: i32, %arg2: memref<2xf32, #tpu.memory_space<smem>>, %arg3: memref<32x128xf32, #tpu.memory_space<vmem>>, %arg4: memref<32x128xf32, #tpu.memory_space<vmem>>, %arg5: memref<1x1xf32, #tpu.memory_space<smem>>, %arg6: memref<1x1xf32, #tpu.memory_space<smem>>, %arg7: memref<1x1xf32, #tpu.memory_space<smem>>, %arg8: memref<1x128xf32, #tpu.memory_space<vmem>>, %arg9: memref<1x128xf32, #tpu.memory_space<vmem>>, %arg10: memref<1xf32, #tpu.memory_space<smem>>) attributes {dimension_semantics = [#tpu.dimension_semantics<arbitrary>, #tpu.dimension_semantics<arbitrary>], iteration_bounds = array<i64: 2, 1>, scalar_prefetch = 1 : i64, scratch_operands = 3 : i64, tpu.core_type = #tpu.core_type<tc>, window_params = [{transform_indices = @transform_0, window_bounds = array<i64: 32, 128>}, {transform_indices = @transform_1, window_bounds = array<i64: 32, 128>}, {transform_indices = @transform_2, window_bounds = array<i64: 1, 1>}, {transform_indices = @transform_3, window_bounds = array<i64: 1, 1>}, {transform_indices = @transform_4, window_bounds = array<i64: 1, 1>}]} {
    %c0_i32 = arith.constant 0 : i32
    %0 = arith.cmpi eq, %arg0, %c0_i32 : i32
    %c0_i32_0 = arith.constant 0 : i32
    %1 = arith.cmpi eq, %arg1, %c0_i32_0 : i32
    %2 = arith.andi %0, %1 : i1
    %3 = arith.extui %2 : i1 to i32
    %c0_i32_1 = arith.constant 0 : i32
    %4 = arith.cmpi ne, %3, %c0_i32_1 : i32
    scf.if %4 {
      %cst = arith.constant 0x7F800000 : f32
      %16 = vector.broadcast %cst : f32 to vector<1x128xf32>
      %c0 = arith.constant 0 : index
      %c0_8 = arith.constant 0 : index
      %17 = vector.load %arg8[%c0, %c0_8] : memref<1x128xf32, #tpu.memory_space<vmem>>, vector<1x128xf32>
      tpu.vector_store %arg8[%c0, %c0_8], %16 {strides = array<i32>} : memref<1x128xf32, #tpu.memory_space<vmem>>, vector<1x128xf32>,
      %cst_9 = arith.constant 0xFF800000 : f32
      %18 = vector.broadcast %cst_9 : f32 to vector<1x128xf32>
      %c0_10 = arith.constant 0 : index
      %c0_11 = arith.constant 0 : index
      %19 = vector.load %arg9[%c0_10, %c0_11] : memref<1x128xf32, #tpu.memory_space<vmem>>, vector<1x128xf32>
      tpu.vector_store %arg9[%c0_10, %c0_11], %18 {strides = array<i32>} : memref<1x128xf32, #tpu.memory_space<vmem>>, vector<1x128xf32>,
    } else {
    }
    %c0_i32_2 = arith.constant 0 : i32
    %5 = arith.cmpi eq, %arg0, %c0_i32_2 : i32
    %6 = arith.extui %5 : i1 to i32
    %c0_i32_3 = arith.constant 0 : i32
    %7 = arith.cmpi ne, %6, %c0_i32_3 : i32
    scf.if %7 {
      %c0 = arith.constant 0 : index
      %c0_8 = arith.constant 0 : index
      %16 = vector.load %arg3[%c0, %c0_8] : memref<32x128xf32, #tpu.memory_space<vmem>>, vector<32x128xf32>
      %17 = tpu.iota {dimensions = array<i32: 0>} : vector<32x128xi32>
      %18 = tpu.iota {dimensions = array<i32: 1>} : vector<32x128xi32>
      %c32_i32 = arith.constant 32 : i32
      %19 = arith.muli %arg1, %c32_i32 : i32
      %20 = vector.broadcast %19 : i32 to vector<32x128xi32>
      %21 = arith.addi %20, %17 : vector<32x128xi32>
      %c128_i32 = arith.constant 128 : i32
      %22 = vector.broadcast %c128_i32 : i32 to vector<32x128xi32>
      %23 = arith.muli %21, %22 : vector<32x128xi32>
      %24 = arith.addi %23, %18 : vector<32x128xi32>
      %c2048_i32 = arith.constant 2048 : i32
      %25 = vector.broadcast %c2048_i32 : i32 to vector<32x128xi32>
      %26 = arith.cmpi slt, %24, %25 : vector<32x128xi32>
      %cst = arith.constant 0x7F800000 : f32
      %27 = vector.broadcast %cst : f32 to vector<32x128xf32>
      %28 = arith.select %26, %16, %27 : vector<32x128xi1>, vector<32x128xf32>
      %cst_9 = arith.constant 0xFF800000 : f32
      %29 = vector.broadcast %cst_9 : f32 to vector<32x128xf32>
      %30 = arith.select %26, %16, %29 : vector<32x128xi1>, vector<32x128xf32>
      %c0_10 = arith.constant 0 : index
      %c0_11 = arith.constant 0 : index
      %31 = vector.load %arg8[%c0_10, %c0_11] : memref<1x128xf32, #tpu.memory_space<vmem>>, vector<1x128xf32>
      %cst_12 = arith.constant dense<0x7F800000> : vector<128xf32>
      %32 = vector.multi_reduction <minimumf>, %28, %cst_12 [0] : vector<32x128xf32> to vector<128xf32>
      %33 = vector.shape_cast %32 : vector<128xf32> to vector<1x128xf32>
      %34 = arith.minimumf %31, %33 : vector<1x128xf32>
      %c0_13 = arith.constant 0 : index
      %c0_14 = arith.constant 0 : index
      %35 = vector.load %arg8[%c0_13, %c0_14] : memref<1x128xf32, #tpu.memory_space<vmem>>, vector<1x128xf32>
      tpu.vector_store %arg8[%c0_13, %c0_14], %34 {strides = array<i32>} : memref<1x128xf32, #tpu.memory_space<vmem>>, vector<1x128xf32>,
      %c0_15 = arith.constant 0 : index
      %c0_16 = arith.constant 0 : index
      %36 = vector.load %arg9[%c0_15, %c0_16] : memref<1x128xf32, #tpu.memory_space<vmem>>, vector<1x128xf32>
      %cst_17 = arith.constant dense<0xFF800000> : vector<128xf32>
      %37 = vector.multi_reduction <maximumf>, %30, %cst_17 [0] : vector<32x128xf32> to vector<128xf32>
      %38 = vector.shape_cast %37 : vector<128xf32> to vector<1x128xf32>
      %39 = arith.maximumf %36, %38 : vector<1x128xf32>
      %c0_18 = arith.constant 0 : index
      %c0_19 = arith.constant 0 : index
      %40 = vector.load %arg9[%c0_18, %c0_19] : memref<1x128xf32, #tpu.memory_space<vmem>>, vector<1x128xf32>
      tpu.vector_store %arg9[%c0_18, %c0_19], %39 {strides = array<i32>} : memref<1x128xf32, #tpu.memory_space<vmem>>, vector<1x128xf32>,
    } else {
    }
    %c1_i32 = arith.constant 1 : i32
    %8 = arith.cmpi eq, %arg0, %c1_i32 : i32
    %c0_i32_4 = arith.constant 0 : i32
    %9 = arith.cmpi eq, %arg1, %c0_i32_4 : i32
    %10 = arith.andi %8, %9 : i1
    %11 = arith.extui %10 : i1 to i32
    %c0_i32_5 = arith.constant 0 : i32
    %12 = arith.cmpi ne, %11, %c0_i32_5 : i32
    scf.if %12 {
      %c0 = arith.constant 0 : index
      %c0_8 = arith.constant 0 : index
      %16 = vector.load %arg8[%c0, %c0_8] : memref<1x128xf32, #tpu.memory_space<vmem>>, vector<1x128xf32>
      %17 = vector.shape_cast %16 : vector<1x128xf32> to vector<1x1x128xf32>
      %cst = arith.constant dense<0x7F800000> : vector<1xf32>
      %18 = vector.multi_reduction <minimumf>, %17, %cst [1, 2] : vector<1x1x128xf32> to vector<1xf32>
      %19 = vector.shape_cast %18 : vector<1xf32> to vector<1x1x1xf32>
      %20 = vector.extract %19[0, 0, 0] : f32 from vector<1x1x1xf32>
      %c0_9 = arith.constant 0 : index
      %c0_10 = arith.constant 0 : index
      %21 = vector.load %arg9[%c0_9, %c0_10] : memref<1x128xf32, #tpu.memory_space<vmem>>, vector<1x128xf32>
      %22 = vector.shape_cast %21 : vector<1x128xf32> to vector<1x1x128xf32>
      %cst_11 = arith.constant dense<0xFF800000> : vector<1xf32>
      %23 = vector.multi_reduction <maximumf>, %22, %cst_11 [1, 2] : vector<1x1x128xf32> to vector<1xf32>
      %24 = vector.shape_cast %23 : vector<1xf32> to vector<1x1x1xf32>
      %25 = vector.extract %24[0, 0, 0] : f32 from vector<1x1x1xf32>
      %c0_12 = arith.constant 0 : index
      %26 = memref.load %arg2[%c0_12] : memref<2xf32, #tpu.memory_space<smem>>
      %c1 = arith.constant 1 : index
      %27 = memref.load %arg2[%c1] : memref<2xf32, #tpu.memory_space<smem>>
      %28 = arith.cmpf oeq, %26, %27 : f32
      %29 = arith.addf %26, %20 : f32
      %cst_13 = arith.constant 0.949999988 : f32
      %30 = arith.mulf %26, %cst_13 : f32
      %cst_14 = arith.constant 5.000000e-02 : f32
      %31 = arith.mulf %20, %cst_14 : f32
      %32 = arith.addf %30, %31 : f32
      %33 = arith.select %28, %29, %32 : f32
      %34 = arith.addf %27, %25 : f32
      %cst_15 = arith.constant 0.949999988 : f32
      %35 = arith.mulf %27, %cst_15 : f32
      %cst_16 = arith.constant 5.000000e-02 : f32
      %36 = arith.mulf %25, %cst_16 : f32
      %37 = arith.addf %35, %36 : f32
      %38 = arith.select %28, %34, %37 : f32
      %39 = math.absf %33 : f32
      %40 = math.absf %38 : f32
      %41 = arith.maximumf %39, %40 : f32
      %cst_17 = arith.constant 9.99999993E-9 : f32
      %42 = arith.maximumf %41, %cst_17 : f32
      %cst_18 = arith.constant 7.000000e+00 : f32
      %43 = arith.divf %42, %cst_18 : f32
      %c0_19 = arith.constant 0 : index
      %c0_20 = arith.constant 0 : index
      %44 = memref.load %arg5[%c0_19, %c0_20] : memref<1x1xf32, #tpu.memory_space<smem>>
      memref.store %33, %arg5[%c0_19, %c0_20] : memref<1x1xf32, #tpu.memory_space<smem>>
      %c0_21 = arith.constant 0 : index
      %c0_22 = arith.constant 0 : index
      %45 = memref.load %arg6[%c0_21, %c0_22] : memref<1x1xf32, #tpu.memory_space<smem>>
      memref.store %38, %arg6[%c0_21, %c0_22] : memref<1x1xf32, #tpu.memory_space<smem>>
      %c0_23 = arith.constant 0 : index
      %c0_24 = arith.constant 0 : index
      %46 = memref.load %arg7[%c0_23, %c0_24] : memref<1x1xf32, #tpu.memory_space<smem>>
      memref.store %43, %arg7[%c0_23, %c0_24] : memref<1x1xf32, #tpu.memory_space<smem>>
      %cst_25 = arith.constant 1.000000e+00 : f32
      %47 = arith.divf %cst_25, %43 : f32
      %c0_26 = arith.constant 0 : index
      %48 = memref.load %arg10[%c0_26] : memref<1xf32, #tpu.memory_space<smem>>
      memref.store %47, %arg10[%c0_26] : memref<1xf32, #tpu.memory_space<smem>>
    } else {
    }
    %c1_i32_6 = arith.constant 1 : i32
    %13 = arith.cmpi eq, %arg0, %c1_i32_6 : i32
    %14 = arith.extui %13 : i1 to i32
    %c0_i32_7 = arith.constant 0 : i32
    %15 = arith.cmpi ne, %14, %c0_i32_7 : i32
    scf.if %15 {
      %c0 = arith.constant 0 : index
      %c0_8 = arith.constant 0 : index
      %16 = vector.load %arg3[%c0, %c0_8] : memref<32x128xf32, #tpu.memory_space<vmem>>, vector<32x128xf32>
      %c0_9 = arith.constant 0 : index
      %17 = memref.load %arg10[%c0_9] : memref<1xf32, #tpu.memory_space<smem>>
      %18 = vector.broadcast %17 : f32 to vector<32x128xf32>
      %19 = arith.mulf %16, %18 : vector<32x128xf32>
      %20 = math.roundeven %19 : vector<32x128xf32>
      %cst = arith.constant -7.000000e+00 : f32
      %cst_10 = arith.constant 6.000000e+00 : f32
      %21 = vector.broadcast %cst : f32 to vector<32x128xf32>
      %22 = arith.maximumf %21, %20 : vector<32x128xf32>
      %23 = vector.broadcast %cst_10 : f32 to vector<32x128xf32>
      %24 = arith.minimumf %23, %22 : vector<32x128xf32>
      %c0_11 = arith.constant 0 : index
      %c0_12 = arith.constant 0 : index
      %25 = vector.load %arg4[%c0_11, %c0_12] : memref<32x128xf32, #tpu.memory_space<vmem>>, vector<32x128xf32>
      tpu.vector_store %arg4[%c0_11, %c0_12], %24 {strides = array<i32>} : memref<32x128xf32, #tpu.memory_space<vmem>>, vector<32x128xf32>,
    } else {
    }
    return
  }
  func.func @transform_0(%arg0: i32, %arg1: i32, %arg2: memref<2xf32, #tpu.memory_space<smem>>) -> (i32, i32) {
    %c0_i32 = arith.constant 0 : i32
    %c0_i32_0 = arith.constant 0 : i32
    return %arg1, %c0_i32 : i32, i32
  }
  func.func @transform_1(%arg0: i32, %arg1: i32, %arg2: memref<2xf32, #tpu.memory_space<smem>>) -> (i32, i32) {
    %0 = arith.muli %arg1, %arg0 : i32
    %c0_i32 = arith.constant 0 : i32
    %c0_i32_0 = arith.constant 0 : i32
    return %0, %c0_i32 : i32, i32
  }
  func.func @transform_2(%arg0: i32, %arg1: i32, %arg2: memref<2xf32, #tpu.memory_space<smem>>) -> (i32, i32) {
    %c0_i32 = arith.constant 0 : i32
    %c0_i32_0 = arith.constant 0 : i32
    %c0_i32_1 = arith.constant 0 : i32
    return %c0_i32, %c0_i32_0 : i32, i32
  }
  func.func @transform_3(%arg0: i32, %arg1: i32, %arg2: memref<2xf32, #tpu.memory_space<smem>>) -> (i32, i32) {
    %c0_i32 = arith.constant 0 : i32
    %c0_i32_0 = arith.constant 0 : i32
    %c0_i32_1 = arith.constant 0 : i32
    return %c0_i32, %c0_i32_0 : i32, i32
  }
  func.func @transform_4(%arg0: i32, %arg1: i32, %arg2: memref<2xf32, #tpu.memory_space<smem>>) -> (i32, i32) {
    %c0_i32 = arith.constant 0 : i32
    %c0_i32_0 = arith.constant 0 : i32
    %c0_i32_1 = arith.constant 0 : i32
    return %c0_i32, %c0_i32_0 : i32, i32
  }
}

</mosaic_0001>

<bundles_post_ra>
// kernel: tpu_custom_call.1
= control target key start
LH: loop header
LB: loop body
LE: loop exit
PB: predicated region body
PF: predicated region fallthrough
CT: control target
= control target key end

     0   :  { %s855_s21 = smov [#allocation6]   ;;  %s995_s0 = inlined_call_operand.hbm [shape: f32[2], index: 0, kind: input, shape index: {}]   ;;  %s996_s1 = inlined_call_operand.hbm [shape: f32[32,128], index: 1, kind: input, shape index: {}]   ;;  %s997_s2 = inlined_call_operand.hbm [shape: f32[32,128], index: 2, kind: output, shape index: {0}]   ;;  %s998_s3 = inlined_call_operand.hbm [shape: f32[1,1], index: 3, kind: output, shape index: {1}]   ;;  %s999_s4 = inlined_call_operand.hbm [shape: f32[1,1], index: 4, kind: output, shape index: {2}]   ;;  %s1000_s5 = inlined_call_operand.hbm [shape: f32[1,1], index: 5, kind: output, shape index: {3}]  }
   0x1   :  { %s12_s20 = sshll.u32 %s995_s0, 4  ;;  %s13_s20 = int_to_ptr.hbm [resolvable:$true] %s12_s20 }
   0x2   :  { %15 = dma.hbm_to_smem %s13_s20, 16, %s855_s21, [#allocation5] }
   0x3   :  { %825 = dma.done.wait [#allocation5], 16 }
   0x4   :  { %826 = vsyncadd [#allocation5], 4294967280 }
   0x5   :  { %18 = sfence }
   0x6   :  { %19 = vsyncpa [#allocation8], 0 }
   0x7   :  { %20 = vsyncpa [#allocation9], 0 }
   0x8   :  { %22 = vsyncpa [#allocation9 + $0x1], 0 }
   0x9   :  { %23 = vsyncpa [#allocation10], 0 }
   0xa   :  { %24 = vsyncpa [#allocation14], 0  ;;  %s902_s22 = smov 0   ;;  %s904_s23 = smov 0  }
   0xb   :  { %s906_s24 = smov 0  }
   0xc LB: > { %s557_s0 = sadd.s32 4294967295, %s853_s24   ;;  %s558_s25 = sadd.s32 4294967294, %s853_s24   ;;  %s853_s24 = sphi %s906_s24, %s30_s24   ;;  %s849_s23 = sphi %s904_s23, %s1006_s23   ;;  %s845_s22 = sphi %s902_s22, %s1005_s22  }
   0xd   : > { %s42_s26 = sadd.s32 1, %s849_s23  ;;  %p559_p0 = scmp.ge.s32.totalorder %s853_s24, 1 }
   0xe   : > { %p44_p1 = scmp.ge.s32.totalorder %s42_s26, 2  ;;  %p164_p2 = scmp.lt.s32.totalorder %s853_s24, 3 }
   0xf   : > { %p924_p3 = scmp.eq.s32.totalorder %s557_s0, 0  ;;  %s178_s30 = sshll.u32 %s996_s1, 4  ;;  %s179_s30 = int_to_ptr.hbm [resolvable:$true] %s178_s30 }
  0x10   : > { %s1008_s26 = smov (%p44_p1, %s42_s26), 0  ;;  %p165_p4 = pnand %p559_p0, %p164_p2 }
  0x11   : > { %s856_s6 = smov [#allocation7]   ;;  %s857_s8 = smov 128  }
  0x12   : > { %p640_p5 = pneg %p165_p4  ;;  %s180_s7 = sshll.u32 %s856_s6, 4  ;;  %s181_s7 = int_to_ptr.vmem [resolvable:$true] %s180_s7 }
  0x13   : > { %s858_s9 = smov 8   ;;  %196 = sbr.rel (%p165_p4) target bundleno = 385 (0x181), region = 24 }
  0x14   : > { %p641_p6 = pnand %p924_p3, %p640_p5 }
  0x16   : > { %643 = dma.hbm_to_vmem [thread:$0]  (!%p641_p6), %s179_s30, 512, %s181_s7, [#allocation8], %s857_s8, %s857_s8, %s858_s9  }
  0x18   : > { %828 = dma.done.wait (%p924_p3), [#allocation8], 512  }
  0x19   : > { %830 = vsyncadd (%p924_p3), [#allocation8], 4294966784  ;;  %p221_p7 = scmp.eq.s32.totalorder %s845_s22, 0 }
  0x1a   : > { %v859_v0 = vmov (%p221_p7), inf   ;;  %v860_v1 = vmov (%p221_p7), -inf  }
  0x1b   : > { %226 = sbr.rel (!%p221_p7) target bundleno = 32 (0x20), region = 32  ;;  %227 = vst [vmem:[#allocation2] sm:$0x1] (%p221_p7), %v859_v0 }
  0x1c   : > { %228 = vst [vmem:[#allocation3] sm:$0x1] (%p221_p7), %v860_v1 }
  0x20 PF: > { %p564_p8 = scmp.ne.s32.totalorder %s845_s22, 0 }
  0x22   : > { %231 = sbr.rel (%p564_p8) target bundleno = 71 (0x47), region = 36 }
  0x27   : > { %v236_v2 = vlaneseq  ;;  %v232_v9 = vld [vmem:[#allocation7] sm:$0xff]  ;;  %v233_v14 = vld [vmem:[#allocation7 + $0x8] sm:$0xff]  ;;  %v234_v15 = vld [vmem:[#allocation7 + $0x10] sm:$0xff] }
  0x28   : > { %v235_v16 = vld [vmem:[#allocation7 + $0x18] sm:$0xff] }
  0x29   : > { %v237_v3 = vshrl.u32 %v236_v2, 7  ;;  %v242_v4 = vand.u32 127, %v236_v2  ;;  %v269_v43 = vld [vmem:[#allocation2] sm:$0x1]  ;;  %v281_v46 = vld [vmem:[#allocation3] sm:$0x1] }
  0x2b   : > { %v238_v5 = vadd.s32 8, %v237_v3  ;;  %v239_v6 = vadd.s32 16, %v237_v3  ;;  %v240_v7 = vadd.s32 24, %v237_v3  ;;  %v249_v8 = vmul.u32 128, %v237_v3 }
  0x2d   : > { %v250_v10 = vmul.u32 128, %v238_v5  ;;  %v251_v11 = vmul.u32 128, %v239_v6  ;;  %v252_v12 = vmul.u32 128, %v240_v7  ;;  %v253_v13 = vadd.s32 %v249_v8, %v242_v4 }
  0x2f   : > { %v254_v17 = vadd.s32 %v250_v10, %v242_v4  ;;  %v255_v18 = vadd.s32 %v251_v11, %v242_v4  ;;  %v256_v19 = vadd.s32 %v252_v12, %v242_v4  ;;  %vm257_vm0 = vcmp.lt.s32.totalorder %v253_v13, 2048 }
  0x30   : > { %v261_v20 = vsel %vm257_vm0, %v232_v9, inf  ;;  %v265_v21 = vsel %vm257_vm0, %v232_v9, -inf }
  0x31   : > { %vm258_vm1 = vcmp.lt.s32.totalorder %v254_v17, 2048  ;;  %vm259_vm2 = vcmp.lt.s32.totalorder %v255_v18, 2048  ;;  %vm260_vm3 = vcmp.lt.s32.totalorder %v256_v19, 2048 }
  0x32   : > { %v262_v22 = vsel %vm258_vm1, %v233_v14, inf  ;;  %v263_v23 = vsel %vm259_vm2, %v234_v15, inf  ;;  %v264_v24 = vsel %vm260_vm3, %v235_v16, inf  ;;  %v266_v25 = vsel %vm258_vm1, %v233_v14, -inf }
  0x33   : > { %v270_v26 = vmin.f32 %v261_v20, %v262_v22  ;;  %v271_v27 = vmin.f32 %v263_v23, %v264_v24  ;;  %v267_v28 = vsel %vm259_vm2, %v234_v15, -inf  ;;  %v268_v29 = vsel %vm260_vm3, %v235_v16, -inf }
  0x34   : > { %v282_v30 = vmax.f32 %v265_v21, %v266_v25  ;;  %v283_v31 = vmax.f32 %v267_v28, %v268_v29 }
  0x35   : > { %v272_v32 = vmin.f32 %v270_v26, %v271_v27 }
  0x36   : > { %v284_v33 = vmax.f32 %v282_v30, %v283_v31 }
  0x37   : > { %v273_v34 = vrot.slane %v272_v32, 4 }
  0x38   : > { %v285_v35 = vrot.slane %v284_v33, 4 }
  0x39   : > { %v274_v36 = vmin.f32 %v272_v32, %v273_v34 }
  0x3a   : > { %v286_v37 = vmax.f32 %v284_v33, %v285_v35 }
  0x3b   : > { %v275_v38 = vrot.slane %v274_v36, 2 }
  0x3c   : > { %v287_v39 = vrot.slane %v286_v37, 2 }
  0x3d   : > { %v276_v40 = vmin.f32 %v274_v36, %v275_v38 }
  0x3e   : > { %v288_v41 = vmax.f32 %v286_v37, %v287_v39 }
  0x3f   : > { %v277_v42 = vrot.slane %v276_v40, 1 }
  0x40   : > { %v289_v44 = vrot.slane %v288_v41, 1 }
  0x41   : > { %v278_v45 = vmin.f32 %v276_v40, %v277_v42 }
  0x42   : > { %v290_v47 = vmax.f32 %v288_v41, %v289_v44 }
  0x43   : > { %v279_v48 = vmin.f32 %v269_v43, %v278_v45 }
  0x44   : > { %v291_v49 = vmax.f32 %v281_v46, %v290_v47 }
  0x45   : > { %280 = vst [vmem:[#allocation2] sm:$0x1] %v279_v48 }
  0x46   : > { %292 = vst [vmem:[#allocation3] sm:$0x1] %v291_v49 }
  0x47 PF: > { %p293_p9 = scmp.eq.s32.totalorder %s845_s22, 1 }
  0x48   : > { %vm299_vm4 = vcmask (%p293_p9), 1040384   ;;  %v861_v54 = vmov (%p293_p9), 7.0   ;;  %s321_s10 = sld [smem:[#allocation6]] (%p293_p9)  ;;  %s862_s6 = smov (%p293_p9), 1e-08  }
  0x49   : > { %297 = sbr.rel (!%p293_p9) target bundleno = 343 (0x157), region = 40  ;;  %697 = vrcp.f32 (%p293_p9), %v861_v54  ;;  %s566_s11 = sld [smem:[#allocation6 + $0x1]] (%p293_p9) }
  0x4c   : > { %v298_v50 = vld [vmem:[#allocation2] sm:$0x1] (%p293_p9) }
  0x4d   : > { %v300_v51 = vsel (%p293_p9), %vm299_vm4, %v298_v50, inf  ;;  %v310_v52 = vld [vmem:[#allocation3] sm:$0x1] (%p293_p9) }
  0x4e   : > { %301 = vmin.xlane.f32.xlu0 %v300_v51  ;;  %v311_v53 = vsel %vm299_vm4, %v310_v52, -inf  ;;  %s325_s12 = smul.f32 0.95, %s321_s10 }
  0x4f   : > { %v698_v55 = vpop.eup %697  ;;  %p323_p10 = scmp.eq.f32.partialorder %s321_s10, %s566_s11  ;;  %s330_s17 = smul.f32 0.95, %s566_s11 }
  0x50   : > { %v339_v59 = vmul.f32 7.0, %v698_v55  ;;  %vm343_vm5 = vweird.f32 %v698_v55 }
  0x52   : > { %v340_v62 = vsub.f32 1.0, %v339_v59 }
  0x54   : > { %v341_v4 = vmul.f32 %v698_v55, %v340_v62 }
  0x56   : > { %312 = vmax.xlane.f32.xlu0 %v311_v53  ;;  %v342_v7 = vadd.f32 %v698_v55, %v341_v4 }
  0x58   : > { %v344_v10 = vsel %vm343_vm5, %v698_v55, %v342_v7 }
  0xc1   : > { %v302_v56 = vpop.xlane.xlu0 %301 }
  0xc2   : > { %v303_v57 = vrot.slane %v302_v56, 4 }
  0xc4   : > { %v304_v58 = vmin.f32 %v302_v56, %v303_v57 }
  0xc6   : > { %v305_v60 = vrot.slane %v304_v58, 2 }
  0xc8   : > { %v306_v61 = vmin.f32 %v304_v58, %v305_v60 }
  0xc9   : > { %v313_v63 = vpop.xlane.xlu0 %312 }
  0xca   : > { %v314_v0 = vrot.slane %v313_v63, 4  ;;  %v307_v1 = vrot.slane %v306_v61, 1 }
  0xcc   : > { %v315_v2 = vmax.f32 %v313_v63, %v314_v0  ;;  %v308_v3 = vmin.f32 %v306_v61, %v307_v1 }
  0xce   : > { %v316_v5 = vrot.slane %v315_v2, 2  ;;  %580 = vpush %v308_v3 }
  0xd0   : > { %v317_v6 = vmax.f32 %v315_v2, %v316_v5 }
  0xd2   : > { %v318_v8 = vrot.slane %v317_v6, 1 }
  0xd4   : > { %v319_v9 = vmax.f32 %v317_v6, %v318_v8 }
  0xd6   : > { %582 = vpush %v319_v9 }
  0xd7   : > { %584 = vpush %v344_v10 }
  0xff   : > { %s581_s13 = spop %580 }
 0x100   : > { %s326_s14 = smul.f32 0.05, %s581_s13  ;;  %s324_s15 = sadd.f32 %s581_s13, %s321_s10 }
 0x102   : > { %s327_s16 = sadd.f32 %s326_s14, %s325_s12 }
 0x104   : > { %s1010_s15 = smov (!%p323_p10, %s324_s15), %s327_s16 }
 0x105   : > { %348 = sst [smem:[#allocation12]] %s1010_s15  ;;  %s334_s27 = sand.u32 2147483647, %s1010_s15 }
 0x107   : > { %s583_s18 = spop %582 }
 0x108   : > { %s331_s19 = smul.f32 0.05, %s583_s18  ;;  %s329_s20 = sadd.f32 %s583_s18, %s566_s11 }
 0x109   : > { %s585_s28 = spop %584 }
 0x10a   : > { %s332_s21 = sadd.f32 %s331_s19, %s330_s17 }
 0x10c   : > { %s1012_s20 = smov (!%p323_p10, %s329_s20), %s332_s21 }
 0x10d   : > { %s335_s29 = sand.u32 2147483647, %s1012_s20  ;;  %350 = sst [smem:[#allocation13]] %s1012_s20 }
 0x10e   : > { %s336_s30 = smax.f32 %s335_s29, %s334_s27 }
 0x10f   : > { %s337_s7 = smax.f32 %s862_s6, %s336_s30 }
 0x110   : > { %s346_s8 = smul.f32 %s585_s28, %s337_s7 }
 0x112   : > { %352 = sst [smem:[#allocation15]] %s346_s8  ;;  %v353_v11 = vstv %s346_s8 }
 0x113   : > { %699 = vrcp.f32 %v353_v11  ;;  %v365_v15 = vand.u32 2147483648, %v353_v11  ;;  %v363_v17 = vand.u32 2147483647, %v353_v11  ;;  %vm359_vm7 = vweird.f32 %v353_v11 }
 0x115   : > { %v366_v19 = vor.u32 1.1754944e-38, %v365_v15  ;;  %vm364_vm9 = vcmp.eq.f32.partialorder %v363_v17, 8.507059e+37 }
 0x119   : > { %v700_v12 = vpop.eup %699 }
 0x11a   : > { %v355_v13 = vmul.f32 %v700_v12, %v353_v11  ;;  %vm360_vm6 = vweird.f32 %v700_v12 }
 0x11b   : > { %vm361_vm8 = vmor %vm359_vm7, %vm360_vm6 }
 0x11c   : > { %v356_v14 = vsub.f32 1.0, %v355_v13 }
 0x11e   : > { %v357_v16 = vmul.f32 %v700_v12, %v356_v14 }
 0x120   : > { %v358_v18 = vadd.f32 %v700_v12, %v357_v16 }
 0x122   : > { %v362_v20 = vsel %vm361_vm8, %v700_v12, %v358_v18 }
 0x123   : > { %v367_v21 = vsel %vm364_vm9, %v366_v19, %v362_v20 }
 0x124   : > { %586 = vpush %v367_v21 }
 0x155   : > { %s587_s9 = spop %586 }
 0x156   : > { %370 = sst [smem:[#allocation4]] %s587_s9 }
 0x157 PF: > { %p567_p11 = scmp.ne.s32.totalorder %s845_s22, 1 }
 0x158   : > { %s378_s10 = sld [smem:[#allocation4]] (!%p567_p11) }
 0x159   : > { %373 = sbr.rel (%p567_p11) target bundleno = 370 (0x172), region = 44 }
 0x15e   : > { %v374_v22 = vld [vmem:[#allocation7] sm:$0xff]  ;;  %v375_v23 = vld [vmem:[#allocation7 + $0x8] sm:$0xff]  ;;  %v376_v24 = vld [vmem:[#allocation7 + $0x10] sm:$0xff]  ;;  %v379_v25 = vstv %s378_s10 }
 0x15f   : > { %v377_v26 = vld [vmem:[#allocation7 + $0x18] sm:$0xff]  ;;  %v380_v27 = vmul.f32 %v379_v25, %v374_v22  ;;  %v381_v28 = vmul.f32 %v379_v25, %v375_v23  ;;  %v382_v29 = vmul.f32 %v379_v25, %v376_v24 }
 0x160   : > { %v383_v33 = vmul.f32 %v379_v25, %v377_v26 }
 0x161   : > { %v588_v30 = vand.u32 2147483647, %v380_v27  ;;  %v590_v31 = vcvt.f32.s32 %v380_v27  ;;  %v596_v32 = vand.u32 2147483647, %v381_v28  ;;  %v598_v34 = vcvt.f32.s32 %v381_v28 }
 0x162   : > { %v606_v35 = vcvt.f32.s32 %v382_v29  ;;  %v593_v37 = vand.u32 2147483648, %v380_v27  ;;  %v604_v38 = vand.u32 2147483647, %v382_v29  ;;  %v601_v40 = vand.u32 2147483648, %v381_v28 }
 0x163   : > { %v591_v36 = vcvt.s32.f32 %v590_v31  ;;  %v599_v39 = vcvt.s32.f32 %v598_v34  ;;  %v609_v42 = vand.u32 2147483648, %v382_v29  ;;  %vm589_vm10 = vcmp.lt.f32.partialorder %v588_v30, 8388608.0 }
 0x164   : > { %v607_v41 = vcvt.s32.f32 %v606_v35  ;;  %vm943_vm11 = vcmp.lt.f32.partialorder %v596_v32, 8388608.0  ;;  %v614_v45 = vcvt.f32.s32 %v383_v33  ;;  %v612_v48 = vand.u32 2147483647, %v383_v33 }
 0x165   : > { %v592_v43 = vand.u32 2147483647, %v591_v36  ;;  %v600_v46 = vand.u32 2147483647, %v599_v39  ;;  %vm605_vm12 = vcmp.lt.f32.partialorder %v604_v38, 8388608.0  ;;  %v617_v51 = vand.u32 2147483648, %v383_v33 }
 0x166   : > { %v608_v47 = vand.u32 2147483647, %v607_v41  ;;  %v615_v50 = vcvt.s32.f32 %v614_v45  ;;  %vm613_vm13 = vcmp.lt.f32.partialorder %v612_v48, 8388608.0 }
 0x167   : > { %v594_v49 = vor.u32 %v593_v37, %v592_v43  ;;  %v602_v52 = vor.u32 %v601_v40, %v600_v46 }
 0x168   : > { %v610_v53 = vor.u32 %v609_v42, %v608_v47  ;;  %v616_v55 = vand.u32 2147483647, %v615_v50 }
 0x169   : > { %v595_v54 = vsel %vm589_vm10, %v594_v49, %v380_v27  ;;  %v603_v57 = vsel %vm943_vm11, %v602_v52, %v381_v28 }
 0x16a   : > { %v388_v56 = vmax.f32 %v595_v54, -7.0  ;;  %v611_v58 = vsel %vm605_vm12, %v610_v53, %v382_v29  ;;  %v389_v59 = vmax.f32 %v603_v57, -7.0  ;;  %v618_v61 = vor.u32 %v617_v51, %v616_v55 }
 0x16b   : > { %v390_v60 = vmax.f32 %v611_v58, -7.0 }
 0x16c   : > { %v392_v62 = vmin.f32 %v388_v56, 6.0  ;;  %v393_v63 = vmin.f32 %v389_v59, 6.0  ;;  %v619_v1 = vsel %vm613_vm13, %v618_v61, %v383_v33 }
 0x16d   : > { %v394_v0 = vmin.f32 %v390_v60, 6.0  ;;  %v391_v2 = vmax.f32 %v619_v1, -7.0 }
 0x16e   : > { %396 = vst [vmem:[#allocation11] sm:$0xff] %v392_v62 }
 0x16f   : > { %397 = vst [vmem:[#allocation11 + $0x8] sm:$0xff] %v393_v63  ;;  %v395_v3 = vmin.f32 %v391_v2, 6.0 }
 0x170   : > { %398 = vst [vmem:[#allocation11 + $0x10] sm:$0xff] %v394_v0 }
 0x171   : > { %399 = vst [vmem:[#allocation11 + $0x18] sm:$0xff] %v395_v3 }
 0x172 PF: > { %p951_p12 = scmp.eq.s32.totalorder %s557_s0, 1  ;;  %s439_s13 = sshll.u32 %s999_s4, 4  ;;  %s440_s13 = int_to_ptr.hbm [resolvable:$true] %s439_s13 }
 0x173   : > { %s863_s14 = smov [#allocation13]   ;;  %s864_s15 = smov [#allocation11]  }
 0x174   : > { %629 = dma.smem_to_hbm (%p951_p12), %s863_s14, 16, %s440_s13, [#allocation14]  }
 0x175   : > { %s414_s16 = sshll.u32 %s864_s15, 4  ;;  %s416_s18 = sshll.u32 %s997_s2, 4  ;;  %s415_s16 = int_to_ptr.vmem [resolvable:$true] %s414_s16  ;;  %s417_s18 = int_to_ptr.hbm [resolvable:$true] %s416_s18 }
 0x176   : > { %s865_s19 = smov 128   ;;  %s866_s20 = smov 8  }
 0x177   : > { %625 = dma.vmem_to_hbm [thread:$0]  (%p951_p12), %s415_s16, 512, %s417_s18, [#allocation9], %s865_s19, %s865_s19, %s866_s20  }
 0x178   : > { %s429_s28 = sshll.u32 %s998_s3, 4  ;;  %s449_s6 = sshll.u32 %s1000_s5, 4  ;;  %s430_s28 = int_to_ptr.hbm [resolvable:$true] %s429_s28  ;;  %s450_s6 = int_to_ptr.hbm [resolvable:$true] %s449_s6 }
 0x179   : > { %s867_s7 = smov [#allocation12]   ;;  %s868_s8 = smov [#allocation15]  }
 0x17a   : > { %627 = dma.smem_to_hbm (%p951_p12), %s867_s7, 16, %s430_s28, [#allocation10]  }
 0x17b   : > { %631 = dma.smem_to_hbm (%p951_p12), %s868_s8, 16, %s450_s6, [#allocation14]  }
 0x17c   : > { %832 = dma.done.wait (%p951_p12), [#allocation10], 16  }
 0x17d   : > { %834 = vsyncadd (%p951_p12), [#allocation10], 4294967280 }
 0x17e   : > { %836 = dma.done.wait (%p951_p12), [#allocation14], 32  }
 0x17f   : > { %838 = vsyncadd (%p951_p12), [#allocation14], 4294967264 }
 0x180   : > { %468 = sfence }
 0x181 PF: > { %p657_p13 = scmp.ge.s32.totalorder %s853_s24, 2  ;;  %p658_p0 = scmp.eq.s32.totalorder %s558_s25, 1 }
 0x183   : > { %p645_p1 = pnand %p658_p0, %p657_p13 }
 0x185   : > { %p646_p2 = pneg %p645_p1 }
 0x187   : > { %840 = dma.done.wait (%p646_p2), [#allocation9], 512  }
 0x188   : > { %842 = vsyncadd (%p646_p2), [#allocation9], 4294966784  ;;  %s30_s24 = sadd.s32 1, %s853_s24   ;;  %s1005_s22 = smov %s849_s23 }
 0x189   : > { %p27_p3 = scmp.ge.s32.totalorder %s30_s24, 4   ;;  %s1006_s23 = smov %s1008_s26 }
 0x18b   :  { %29 = sbr.rel (!%p27_p3) target bundleno = 12 (0xc), region = 107 }
 0x190   :  { %484 = vsyncpa [#allocation8], 1 }
 0x191   :  { %486 = vsyncpa [#allocation8 + $0x1], 1 }
 0x192   :  { %487 = vsyncpa [#allocation9], 1 }
 0x193   :  { %489 = vsyncpa [#allocation9 + $0x1], 1 }
 0x194   :  { %490 = vsyncpa [#allocation10], 1 }
 0x195   :  { %492 = vsyncpa [#allocation10 + $0x1], 1 }
 0x196   :  { %493 = vsyncpa [#allocation14], 1 }

</bundles_post_ra>
